<compile_context>
chip_gen: v7x
topology: tpu7x:2x2x1
jax: 0.10.0
libtpu: 0.0.40
codegen_flags: <defaults>
</compile_context>

<pallas_src>
import jax
import jax.numpy as jnp
from jax.experimental import pallas as pl
from jax.experimental.pallas import tpu as pltpu


def _vreward_kernel(x_ref, eps_ref,
                    w1_ref, b1_ref, w2_ref, b2_ref,
                    pmean_ref, plogvar_ref,
                    reward_ref, klp_ref):
    K = eps_ref.shape[-1]

    # ---- fused first layer (mean & logvar heads side by side): MXU in bf16,
    #      f32 accumulation; bias-add + ReLU in f32 on the VPU ----
    x = x_ref[...].astype(jnp.bfloat16)                         # (TB, H)
    h = jnp.dot(x, w1_ref[...], preferred_element_type=jnp.float32) + b1_ref[...]
    h = jnp.maximum(h, 0.0)                                     # (TB, 2*h2) = [hm | hl]
    # TODO(synk): Dropout acts as identity (eval mode); no training-mode mask.

    # ---- fused second layer: block-diagonal weight -> [mean | logvar] ----
    out2 = jnp.dot(h.astype(jnp.bfloat16), w2_ref[...],
                   preferred_element_type=jnp.float32) + b2_ref[...]   # (TB, 2K)
    mean = out2[:, :K]
    logvar = out2[:, K:]

    # ---- reparameterized sample ----
    std = jnp.exp(0.5 * logvar)
    reward_ref[...] = mean + eps_ref[...] * std                 # (TB, K)

    # ---- KL( N(mean, std) || N(prior_mean, prior_std) ), per-tile partial sum ----
    pm = pmean_ref[...]                                         # (1, K)
    plv = plogvar_ref[...]                                      # (1, K)
    kl = (0.5 * (plv - logvar)
          + (jnp.exp(logvar) + (mean - pm) ** 2) * (0.5 * jnp.exp(-plv))
          - 0.5)
    klp_ref[...] = jnp.sum(kl).reshape(1, 1, 1)


def variational_reward_head(x, fparams, eps, *, tile_b=128):
    """x: (B, H) f32, eps: (B, K) f32. Returns (reward (B, K), kl_loss scalar)."""
    B, H = x.shape
    K = fparams["prior_mean"].shape[-1]
    two_h2 = fparams["w1"].shape[1]
    two_k = fparams["w2"].shape[1]

    if B % tile_b != 0:
        # Fall back to a single full-batch tile (full-dim blocks are always legal).
        tile_b = B
    num_tiles = B // tile_b

    reward, kl_part = pl.pallas_call(
        _vreward_kernel,
        grid=(num_tiles,),
        in_specs=[
            # streamed per batch tile
            pl.BlockSpec((tile_b, H), lambda i: (i, 0)),          # x
            pl.BlockSpec((tile_b, K), lambda i: (i, 0)),          # eps
            # resident across all batch tiles (constant index_map -> single DMA)
            pl.BlockSpec((H, two_h2), lambda i: (0, 0)),          # w1 (fused, bf16)
            pl.BlockSpec((1, two_h2), lambda i: (0, 0)),          # b1 (fused, f32)
            pl.BlockSpec((two_h2, two_k), lambda i: (0, 0)),      # w2 (block-diag, bf16)
            pl.BlockSpec((1, two_k), lambda i: (0, 0)),           # b2 (fused, f32)
            pl.BlockSpec((1, K), lambda i: (0, 0)),               # prior_mean
            pl.BlockSpec((1, K), lambda i: (0, 0)),               # prior_logvar
        ],
        out_specs=(
            pl.BlockSpec((tile_b, K), lambda i: (i, 0)),          # reward
            pl.BlockSpec((1, 1, 1), lambda i: (i, 0, 0)),         # per-tile KL partial
        ),
        out_shape=(
            jax.ShapeDtypeStruct((B, K), jnp.float32),
            jax.ShapeDtypeStruct((num_tiles, 1, 1), jnp.float32),
        ),
        compiler_params=pltpu.CompilerParams(
            dimension_semantics=("parallel",),
            vmem_limit_bytes=32 * 1024 * 1024,
        ),
    )(x, eps,
      fparams["w1"], fparams["b1"], fparams["w2"], fparams["b2"],
      fparams["prior_mean"], fparams["prior_logvar"])

    # kl.sum(-1).mean() over the whole batch == (sum of per-tile partials) / B
    kl_loss = jnp.sum(kl_part) / B
    return reward, kl_loss


# ----------------------------- parameters -----------------------------------

def init_params(key, hidden_size, num_objectives):
    """Raw per-head f32 params, stored (in, out) i.e. transposed vs nn.Linear."""
    h2 = hidden_size // 2
    ks = jax.random.split(key, 8)
    s = 0.02
    return {
        "w1m": s * jax.random.normal(ks[0], (hidden_size, h2), jnp.float32),
        "b1m": s * jax.random.normal(ks[1], (1, h2), jnp.float32),
        "w2m": s * jax.random.normal(ks[2], (h2, num_objectives), jnp.float32),
        "b2m": s * jax.random.normal(ks[3], (1, num_objectives), jnp.float32),
        "w1l": s * jax.random.normal(ks[4], (hidden_size, h2), jnp.float32),
        "b1l": s * jax.random.normal(ks[5], (1, h2), jnp.float32),
        "w2l": s * jax.random.normal(ks[6], (h2, num_objectives), jnp.float32),
        "b2l": s * jax.random.normal(ks[7], (1, num_objectives), jnp.float32),
        # nn.Parameter(torch.zeros(num_objectives))
        "prior_mean": jnp.zeros((1, num_objectives), jnp.float32),
        "prior_logvar": jnp.zeros((1, num_objectives), jnp.float32),
    }


def fuse_params(p):
    """Fuse the two heads into full-lane MXU weights; store weights in bf16."""
    h2 = p["w1m"].shape[1]
    K = p["w2m"].shape[1]
    w1 = jnp.concatenate([p["w1m"], p["w1l"]], axis=1)            # (H, 2*h2)
    b1 = jnp.concatenate([p["b1m"], p["b1l"]], axis=1)            # (1, 2*h2)
    z = jnp.zeros((h2, K), jnp.float32)
    w2 = jnp.block([[p["w2m"], z], [z, p["w2l"]]])                # (2*h2, 2K) block-diag
    b2 = jnp.concatenate([p["b2m"], p["b2l"]], axis=1)            # (1, 2K)
    return {
        "w1": w1.astype(jnp.bfloat16),
        "b1": b1,
        "w2": w2.astype(jnp.bfloat16),
        "b2": b2,
        "prior_mean": p["prior_mean"],
        "prior_logvar": p["prior_logvar"],
    }


# ----------------------------- references -----------------------------------

def _reference_fused(x, fp, eps):
    """Same math as the kernel (fused bf16 weights, f32 accumulation)."""
    K = fp["prior_mean"].shape[-1]
    xb = x.astype(jnp.bfloat16)
    h = jnp.maximum(
        jnp.dot(xb, fp["w1"], preferred_element_type=jnp.float32) + fp["b1"], 0.0)
    out2 = jnp.dot(h.astype(jnp.bfloat16), fp["w2"],
                   preferred_element_type=jnp.float32) + fp["b2"]
    mean, logvar = out2[:, :K], out2[:, K:]
    std = jnp.exp(0.5 * logvar)
    reward = mean + eps * std
    pm, plv = fp["prior_mean"], fp["prior_logvar"]
    kl = (0.5 * (plv - logvar)
          + (jnp.exp(logvar) + (mean - pm) ** 2) * (0.5 * jnp.exp(-plv))
          - 0.5)
    return reward, jnp.mean(jnp.sum(kl, axis=-1))


def _reference_module(x, p, eps):
    """Unfused f32 reference mirroring the PyTorch module (eval mode)."""
    hm = jnp.maximum(x @ p["w1m"] + p["b1m"], 0.0)
    mean = hm @ p["w2m"] + p["b2m"]
    hl = jnp.maximum(x @ p["w1l"] + p["b1l"], 0.0)
    logvar = hl @ p["w2l"] + p["b2l"]
    std = jnp.exp(0.5 * logvar)
    reward = mean + eps * std
    pvar = jnp.exp(p["prior_logvar"])
    kl = (0.5 * (p["prior_logvar"] - logvar)
          + (jnp.exp(logvar) + (mean - p["prior_mean"]) ** 2) / (2.0 * pvar)
          - 0.5)
    return reward, jnp.mean(jnp.sum(kl, axis=-1))


if __name__ == "__main__":
    hidden_size = 128
    num_objectives = 4
    batch = 256          # 2 grid steps at tile_b=128 -> exercises the pipeline
    tile_b = 128

    key = jax.random.PRNGKey(0)
    k_params, k_x, k_eps = jax.random.split(key, 3)

    raw = init_params(k_params, hidden_size, num_objectives)
    fused = fuse_params(raw)
    x = jax.random.normal(k_x, (batch, hidden_size), jnp.float32)
    eps = jax.random.normal(k_eps, (batch, num_objectives), jnp.float32)

    reward, kl_loss = variational_reward_head(x, fused, eps, tile_b=tile_b)
    reward = jax.block_until_ready(reward)
    kl_loss = jax.block_until_ready(kl_loss)

    # Tight check vs. a reference doing the identical fused/bf16 math.
    r_bf, kl_bf = _reference_fused(x, fused, eps)
    assert jnp.allclose(reward, r_bf, atol=1e-4, rtol=1e-2), "reward mismatch (fused ref)"
    assert jnp.allclose(kl_loss, kl_bf, atol=1e-4, rtol=1e-2), "kl mismatch (fused ref)"

    # Loose check vs. the unfused f32 module reference (bf16 weight storage drift).
    r_f32, kl_f32 = _reference_module(x, raw, eps)
    assert jnp.allclose(reward, r_f32, atol=1e-2, rtol=1e-1), "reward drift (f32 ref)"
    assert jnp.allclose(kl_loss, kl_f32, atol=1e-2, rtol=1e-1), "kl drift (f32 ref)"

    print("KERNEL_OK")
</pallas_src>

<mosaic_0001>
module attributes {stable_mosaic.version = 11 : i64} {
  func.func @_vreward_kernel(%arg0: i32, %arg1: memref<128x128xf32, #tpu.memory_space<vmem>>, %arg2: memref<128x4xf32, #tpu.memory_space<vmem>>, %arg3: memref<128x128xbf16, #tpu.memory_space<vmem>>, %arg4: memref<1x128xf32, #tpu.memory_space<vmem>>, %arg5: memref<128x8xbf16, #tpu.memory_space<vmem>>, %arg6: memref<1x8xf32, #tpu.memory_space<vmem>>, %arg7: memref<1x4xf32, #tpu.memory_space<vmem>>, %arg8: memref<1x4xf32, #tpu.memory_space<vmem>>, %arg9: memref<128x4xf32, #tpu.memory_space<vmem>>, %arg10: memref<1x1x1xf32, #tpu.memory_space<vmem>>) attributes {dimension_semantics = [#tpu.dimension_semantics<parallel>], iteration_bounds = array<i64: 2>, scalar_prefetch = 0 : i64, scratch_operands = 0 : i64, tpu.core_type = #tpu.core_type<tc>, window_params = [{transform_indices = @transform_0, window_bounds = array<i64: 128, 128>}, {transform_indices = @transform_1, window_bounds = array<i64: 128, 4>}, {pipeline_mode = #tpu.pipeline_mode<synchronous>, transform_indices = @transform_2, window_bounds = array<i64: 128, 128>}, {pipeline_mode = #tpu.pipeline_mode<synchronous>, transform_indices = @transform_3, window_bounds = array<i64: 1, 128>}, {pipeline_mode = #tpu.pipeline_mode<synchronous>, transform_indices = @transform_4, window_bounds = array<i64: 128, 8>}, {pipeline_mode = #tpu.pipeline_mode<synchronous>, transform_indices = @transform_5, window_bounds = array<i64: 1, 8>}, {pipeline_mode = #tpu.pipeline_mode<synchronous>, transform_indices = @transform_6, window_bounds = array<i64: 1, 4>}, {pipeline_mode = #tpu.pipeline_mode<synchronous>, transform_indices = @transform_7, window_bounds = array<i64: 1, 4>}, {transform_indices = @transform_8, window_bounds = array<i64: 128, 4>}, {transform_indices = @transform_9, window_bounds = array<i64: 1, 1, 1>}]} {
    %c0 = arith.constant 0 : index
    %c0_0 = arith.constant 0 : index
    %0 = vector.load %arg1[%c0, %c0_0] : memref<128x128xf32, #tpu.memory_space<vmem>>, vector<128x128xf32>
    %1 = arith.truncf %0 : vector<128x128xf32> to vector<128x128xbf16>
    %c0_1 = arith.constant 0 : index
    %c0_2 = arith.constant 0 : index
    %2 = vector.load %arg3[%c0_1, %c0_2] : memref<128x128xbf16, #tpu.memory_space<vmem>>, vector<128x128xbf16>
    %cst = arith.constant dense<0.000000e+00> : vector<128x128xf32>
    %3 = tpu.matmul %1, %2, %cst {dimension_numbers = #tpu.dot_dimension_numbers<[1], [0], [0], [1], [0, 0, 1, 1], [], []>} : vector<128x128xbf16>, vector<128x128xbf16>, vector<128x128xf32> -> vector<128x128xf32>
    %c0_3 = arith.constant 0 : index
    %c0_4 = arith.constant 0 : index
    %4 = vector.load %arg4[%c0_3, %c0_4] : memref<1x128xf32, #tpu.memory_space<vmem>>, vector<1x128xf32>
    %5 = vector.broadcast %4 : vector<1x128xf32> to vector<128x128xf32>
    %6 = arith.addf %3, %5 : vector<128x128xf32>
    %cst_5 = arith.constant 0.000000e+00 : f32
    %7 = vector.broadcast %cst_5 : f32 to vector<128x128xf32>
    %8 = arith.maximumf %6, %7 : vector<128x128xf32>
    %9 = arith.truncf %8 : vector<128x128xf32> to vector<128x128xbf16>
    %c0_6 = arith.constant 0 : index
    %c0_7 = arith.constant 0 : index
    %10 = vector.load %arg5[%c0_6, %c0_7] : memref<128x8xbf16, #tpu.memory_space<vmem>>, vector<128x8xbf16>
    %cst_8 = arith.constant dense<0.000000e+00> : vector<128x8xf32>
    %11 = tpu.matmul %9, %10, %cst_8 {dimension_numbers = #tpu.dot_dimension_numbers<[1], [0], [0], [1], [0, 0, 1, 1], [], []>} : vector<128x128xbf16>, vector<128x8xbf16>, vector<128x8xf32> -> vector<128x8xf32>
    %c0_9 = arith.constant 0 : index
    %c0_10 = arith.constant 0 : index
    %12 = vector.load %arg6[%c0_9, %c0_10] : memref<1x8xf32, #tpu.memory_space<vmem>>, vector<1x8xf32>
    %13 = vector.broadcast %12 : vector<1x8xf32> to vector<128x8xf32>
    %14 = arith.addf %11, %13 : vector<128x8xf32>
    %15 = vector.extract_strided_slice %14 {offsets = [0, 0], sizes = [128, 4], strides = [1, 1]} : vector<128x8xf32> to vector<128x4xf32>
    %16 = vector.extract_strided_slice %14 {offsets = [0, 4], sizes = [128, 4], strides = [1, 1]} : vector<128x8xf32> to vector<128x4xf32>
    %cst_11 = arith.constant 5.000000e-01 : f32
    %17 = vector.broadcast %cst_11 : f32 to vector<128x4xf32>
    %18 = arith.mulf %17, %16 : vector<128x4xf32>
    %19 = math.exp %18 : vector<128x4xf32>
    %c0_12 = arith.constant 0 : index
    %c0_13 = arith.constant 0 : index
    %20 = vector.load %arg2[%c0_12, %c0_13] : memref<128x4xf32, #tpu.memory_space<vmem>>, vector<128x4xf32>
    %21 = arith.mulf %20, %19 : vector<128x4xf32>
    %22 = arith.addf %15, %21 : vector<128x4xf32>
    %c0_14 = arith.constant 0 : index
    %c0_15 = arith.constant 0 : index
    %23 = vector.load %arg9[%c0_14, %c0_15] : memref<128x4xf32, #tpu.memory_space<vmem>>, vector<128x4xf32>
    tpu.vector_store %arg9[%c0_14, %c0_15], %22 {strides = array<i32>} : memref<128x4xf32, #tpu.memory_space<vmem>>, vector<128x4xf32>,
    %c0_16 = arith.constant 0 : index
    %c0_17 = arith.constant 0 : index
    %24 = vector.load %arg7[%c0_16, %c0_17] : memref<1x4xf32, #tpu.memory_space<vmem>>, vector<1x4xf32>
    %c0_18 = arith.constant 0 : index
    %c0_19 = arith.constant 0 : index
    %25 = vector.load %arg8[%c0_18, %c0_19] : memref<1x4xf32, #tpu.memory_space<vmem>>, vector<1x4xf32>
    %26 = vector.broadcast %25 : vector<1x4xf32> to vector<128x4xf32>
    %27 = arith.subf %26, %16 : vector<128x4xf32>
    %cst_20 = arith.constant 5.000000e-01 : f32
    %28 = vector.broadcast %cst_20 : f32 to vector<128x4xf32>
    %29 = arith.mulf %28, %27 : vector<128x4xf32>
    %30 = math.exp %16 : vector<128x4xf32>
    %31 = vector.broadcast %24 : vector<1x4xf32> to vector<128x4xf32>
    %32 = arith.subf %15, %31 : vector<128x4xf32>
    %33 = arith.mulf %32, %32 : vector<128x4xf32>
    %34 = arith.addf %30, %33 : vector<128x4xf32>
    %cst_21 = arith.constant 0.000000e+00 : f32
    %35 = vector.broadcast %cst_21 : f32 to vector<1x4xf32>
    %36 = arith.subf %35, %25 : vector<1x4xf32>
    %37 = math.exp %36 : vector<1x4xf32>
    %cst_22 = arith.constant 5.000000e-01 : f32
    %38 = vector.broadcast %cst_22 : f32 to vector<1x4xf32>
    %39 = arith.mulf %38, %37 : vector<1x4xf32>
    %40 = vector.broadcast %39 : vector<1x4xf32> to vector<128x4xf32>
    %41 = arith.mulf %34, %40 : vector<128x4xf32>
    %42 = arith.addf %29, %41 : vector<128x4xf32>
    %cst_23 = arith.constant 5.000000e-01 : f32
    %43 = vector.broadcast %cst_23 : f32 to vector<128x4xf32>
    %44 = arith.subf %42, %43 : vector<128x4xf32>
    %45 = vector.shape_cast %44 : vector<128x4xf32> to vector<1x128x4xf32>
    %cst_24 = arith.constant dense<0.000000e+00> : vector<1xf32>
    %46 = vector.multi_reduction <add>, %45, %cst_24 [1, 2] : vector<1x128x4xf32> to vector<1xf32>
    %47 = vector.shape_cast %46 : vector<1xf32> to vector<1x1x1xf32>
    %48 = vector.extract %47[0, 0, 0] : f32 from vector<1x1x1xf32>
    %49 = vector.broadcast %48 : f32 to vector<1x1x1xf32>
    %c0_25 = arith.constant 0 : index
    %c0_26 = arith.constant 0 : index
    %c0_27 = arith.constant 0 : index
    %50 = vector.load %arg10[%c0_25, %c0_26, %c0_27] : memref<1x1x1xf32, #tpu.memory_space<vmem>>, vector<1x1x1xf32>
    tpu.vector_store %arg10[%c0_25, %c0_26, %c0_27], %49 {strides = array<i32>} : memref<1x1x1xf32, #tpu.memory_space<vmem>>, vector<1x1x1xf32>,
    return
  }
  func.func @transform_0(%arg0: i32) -> (i32, i32) {
    %c0_i32 = arith.constant 0 : i32
    %c0_i32_0 = arith.constant 0 : i32
    return %arg0, %c0_i32 : i32, i32
  }
  func.func @transform_1(%arg0: i32) -> (i32, i32) {
    %c0_i32 = arith.constant 0 : i32
    %c0_i32_0 = arith.constant 0 : i32
    return %arg0, %c0_i32 : i32, i32
  }
  func.func @transform_2(%arg0: i32) -> (i32, i32) {
    %c0_i32 = arith.constant 0 : i32
    %c0_i32_0 = arith.constant 0 : i32
    %c0_i32_1 = arith.constant 0 : i32
    return %c0_i32, %c0_i32_0 : i32, i32
  }
  func.func @transform_3(%arg0: i32) -> (i32, i32) {
    %c0_i32 = arith.constant 0 : i32
    %c0_i32_0 = arith.constant 0 : i32
    %c0_i32_1 = arith.constant 0 : i32
    return %c0_i32, %c0_i32_0 : i32, i32
  }
  func.func @transform_4(%arg0: i32) -> (i32, i32) {
    %c0_i32 = arith.constant 0 : i32
    %c0_i32_0 = arith.constant 0 : i32
    %c0_i32_1 = arith.constant 0 : i32
    return %c0_i32, %c0_i32_0 : i32, i32
  }
  func.func @transform_5(%arg0: i32) -> (i32, i32) {
    %c0_i32 = arith.constant 0 : i32
    %c0_i32_0 = arith.constant 0 : i32
    %c0_i32_1 = arith.constant 0 : i32
    return %c0_i32, %c0_i32_0 : i32, i32
  }
  func.func @transform_6(%arg0: i32) -> (i32, i32) {
    %c0_i32 = arith.constant 0 : i32
    %c0_i32_0 = arith.constant 0 : i32
    %c0_i32_1 = arith.constant 0 : i32
    return %c0_i32, %c0_i32_0 : i32, i32
  }
  func.func @transform_7(%arg0: i32) -> (i32, i32) {
    %c0_i32 = arith.constant 0 : i32
    %c0_i32_0 = arith.constant 0 : i32
    %c0_i32_1 = arith.constant 0 : i32
    return %c0_i32, %c0_i32_0 : i32, i32
  }
  func.func @transform_8(%arg0: i32) -> (i32, i32) {
    %c0_i32 = arith.constant 0 : i32
    %c0_i32_0 = arith.constant 0 : i32
    return %arg0, %c0_i32 : i32, i32
  }
  func.func @transform_9(%arg0: i32) -> (i32, i32, i32) {
    %c0_i32 = arith.constant 0 : i32
    %c0_i32_0 = arith.constant 0 : i32
    %c0_i32_1 = arith.constant 0 : i32
    return %arg0, %c0_i32, %c0_i32_0 : i32, i32, i32
  }
}

</mosaic_0001>

<bundles_post_ra>
// kernel: tpu_custom_call.1
= control target key start
LH: loop header
LB: loop body
LE: loop exit
PB: predicated region body
PF: predicated region fallthrough
CT: control target
= control target key end

     0   :  { %s1741_s30 = smov 0   ;;  %s2172_s0 = inlined_call_operand.vmem [shape: f32[256,128], index: 0, kind: input, shape index: {}]   ;;  %s2173_s1 = inlined_call_operand.vmem [shape: f32[256,4], index: 1, kind: input, shape index: {}]   ;;  %s2174_s2 = inlined_call_operand.vmem [shape: bf16[128,128], index: 2, kind: input, shape index: {}]   ;;  %s2175_s3 = inlined_call_operand.vmem [shape: f32[1,128], index: 3, kind: input, shape index: {}]   ;;  %s2176_s4 = inlined_call_operand.vmem [shape: bf16[128,8], index: 4, kind: input, shape index: {}]   ;;  %s2177_s5 = inlined_call_operand.vmem [shape: f32[1,8], index: 5, kind: input, shape index: {}]   ;;  %s2178_s6 = inlined_call_operand.vmem [shape: f32[1,4], index: 6, kind: input, shape index: {}]   ;;  %s2179_s7 = inlined_call_operand.vmem [shape: f32[1,4], index: 7, kind: input, shape index: {}]   ;;  %s2180_s8 = inlined_call_operand.vmem [shape: f32[256,4], index: 8, kind: output, shape index: {0}]   ;;  %s2181_s9 = inlined_call_operand.vmem [shape: f32[2,1,1], index: 9, kind: output, shape index: {1}]  }
   0x1 LB: > { %s1747_s10 = sadd.s32 4294967295, %s1687_s30   ;;  %p1447_p0 = scmp.ge.s32.totalorder %s1687_s30, 1  ;;  %s1687_s30 = sphi %s1741_s30, %s20_s30  }
   0x2   : > { %p302_p1 = scmp.lt.s32.totalorder %s1687_s30, 3 }
   0x4   : > { %p303_p2 = pnand %p1447_p0, %p302_p1 }
   0x5   : > { %v1599_v0 = vld [vmem:[%s2174_s2] sm:$0xff] (!%p303_p2)   ;;  %s1448_s13 = sshll.u32 (!%p303_p2), %s1747_s10, 4  ;;  %v1600_v1 = vld [vmem:[%s2174_s2 + $0x8] sm:$0xff] (!%p303_p2)   ;;  %v1601_v2 = vld [vmem:[%s2174_s2 + $0x10] sm:$0xff] (!%p303_p2)   ;;  %s1689_s15 = smov (!%p303_p2), 4   ;;  %vm912_vm0 = vcmask (!%p303_p2), 31744  }
   0x6   : > { %306 = sbr.rel (%p303_p2) target bundleno = 983 (0x3d7), region = 52  ;;  %p347_p3 = scmp.lt.s32.totalorder (!%p303_p2), %s1448_s13, 31  ;;  %1523 = vmatprep.subr.bf16.mxu0 (!%p303_p2), %v1599_v0  ;;  %v1602_v3 = vld [vmem:[%s2174_s2 + $0x18] sm:$0xff] (!%p303_p2)   ;;  %v1603_v7 = vld [vmem:[%s2174_s2 + $0x20] sm:$0xff] (!%p303_p2)   ;;  %v1608_v9 = vld [vmem:[%s2176_s4 + $0x8] sm:$0xff] (!%p303_p2)   ;;  %vm1348_vm1 = vcmask (!%p303_p2), 0  }
   0x7   : > { %1524 = vmatpush3.bf16.msra.mxu0 (!%p303_p2), %v1599_v0  ;;  %v1607_v8 = vld [vmem:[%s2176_s4] sm:$0xff] (!%p303_p2)   ;;  %v1604_v10 = vld [vmem:[%s2174_s2 + $0x28] sm:$0xff] (!%p303_p2)   ;;  %v1609_v11 = vld [vmem:[%s2176_s4 + $0x10] sm:$0xff] (!%p303_p2)   ;;  %s1690_s22 = smov (!%p303_p2), 124   ;;  %p364_p4 = scmp.lt.s32.totalorder (!%p303_p2), %s1747_s10, 1 }
   0x8   : > { %1525 = vmatprep.subr.bf16.mxu0 (!%p303_p2), %v1600_v1  ;;  %1555 = vmatprep.subr.bf16.mxu1 (!%p303_p2), %v1607_v8  ;;  %v1605_v12 = vld [vmem:[%s2174_s2 + $0x30] sm:$0xff] (!%p303_p2)   ;;  %v1610_v13 = vld [vmem:[%s2176_s4 + $0x18] sm:$0xff] (!%p303_p2)   ;;  %v1611_v15 = vld [vmem:[%s2176_s4 + $0x20] sm:$0xff] (!%p303_p2)  }
   0x9   : > { %1556 = vmatpush3.bf16.msra.mxu1 (!%p303_p2), %v1607_v8  ;;  %v1606_v14 = vld [vmem:[%s2174_s2 + $0x38] sm:$0xff] (!%p303_p2)   ;;  %v1612_v21 = vld [vmem:[%s2176_s4 + $0x28] sm:$0xff] (!%p303_p2)   ;;  %v1613_v38 = vld [vmem:[%s2176_s4 + $0x30] sm:$0xff] (!%p303_p2)  }
   0xa   : > { %1557 = vmatprep.subr.bf16.mxu1 (!%p303_p2), %v1608_v9  ;;  %v1614_v39 = vld [vmem:[%s2176_s4 + $0x38] sm:$0xff] (!%p303_p2)   ;;  %v1454_v40 = vld [vmem:[%s2175_s3] ss:$0 sm:$0xff] (!%p303_p2) }
   0xb   : > { %1526 = vmatpush3.bf16.msra.mxu0 (!%p303_p2), %v1600_v1 }
   0xc   : > { %1527 = vmatprep.subr.bf16.mxu0 (!%p303_p2), %v1601_v2 }
   0xd   : > { %s2183_s13 = smov (!%p347_p3, %s1448_s13), 31  ;;  %1558 = vmatpush3.bf16.msra.mxu1 %v1608_v9  ;;  %s2185_s10 = smov (!%p364_p4, %s1747_s10), 1 }
   0xe   : > { %s1761_s18 = sshll.u32 %s2183_s13, 3  ;;  %1559 = vmatprep.subr.bf16.mxu1 %v1609_v11  ;;  %s366_s11 = scalar_lea.vmem %s2181_s9, %s2185_s10 }
   0xf   : > { %s1767_s21 = scalar_lea.vmem %s2172_s0, %s1761_s18  ;;  %1528 = vmatpush3.bf16.msra.mxu0 %v1601_v2  ;;  %s2085_s25 = scalar_lea.vmem %s2173_s1, %s1761_s18 }
  0x10   : > { %v368_v4 = vld [vmem:[%s1767_s21] sm:$0xff]  ;;  %v369_v5 = vld [vmem:[%s1767_s21 + $0x8] sm:$0xff]  ;;  %1529 = vmatprep.subr.bf16.mxu0 %v1602_v3  ;;  %v370_v16 = vld [vmem:[%s1767_s21 + $0x10] sm:$0xff]  ;;  %s2095_s28 = scalar_lea.vmem %s2180_s8, %s1761_s18 }
  0x11   : > { %v384_v6 = vpack.c.bf16 %v369_v5, %v368_v4  ;;  %1560 = vmatpush3.bf16.msra.mxu1 %v1609_v11  ;;  %v371_v17 = vld [vmem:[%s1767_s21 + $0x18] sm:$0xff]  ;;  %v372_v18 = vld [vmem:[%s1767_s21 + $0x20] sm:$0xff]  ;;  %v373_v19 = vld [vmem:[%s1767_s21 + $0x28] sm:$0xff] }
  0x12   : > { %1561 = vmatprep.subr.bf16.mxu1 %v1610_v13  ;;  %v385_v20 = vpack.c.bf16 %v371_v17, %v370_v16  ;;  %v386_v22 = vpack.c.bf16 %v373_v19, %v372_v18  ;;  %v374_v23 = vld [vmem:[%s1767_s21 + $0x30] sm:$0xff]  ;;  %v375_v24 = vld [vmem:[%s1767_s21 + $0x38] sm:$0xff]  ;;  %v376_v25 = vld [vmem:[%s1767_s21 + $0x40] sm:$0xff] }
  0x13   : > { %1539 = vmatprep.mubr.bf16.mxu0 %v384_v6  ;;  %1530 = vmatpush3.bf16.msra.mxu0 %v1602_v3  ;;  %v377_v26 = vld [vmem:[%s1767_s21 + $0x48] sm:$0xff]  ;;  %v387_v27 = vpack.c.bf16 %v375_v24, %v374_v23  ;;  %v378_v29 = vld [vmem:[%s1767_s21 + $0x50] sm:$0xff]  ;;  %v379_v30 = vld [vmem:[%s1767_s21 + $0x58] sm:$0xff] }
  0x14   : > { %1531 = vmatprep.subr.bf16.mxu0 %v1603_v7  ;;  %v388_v28 = vpack.c.bf16 %v377_v26, %v376_v25  ;;  %v380_v31 = vld [vmem:[%s1767_s21 + $0x60] sm:$0xff]  ;;  %v381_v32 = vld [vmem:[%s1767_s21 + $0x68] sm:$0xff]  ;;  %v389_v33 = vpack.c.bf16 %v379_v30, %v378_v29  ;;  %v382_v35 = vld [vmem:[%s1767_s21 + $0x70] sm:$0xff] }
  0x15   : > { %1562 = vmatpush3.bf16.msra.mxu1 %v1610_v13  ;;  %v390_v34 = vpack.c.bf16 %v381_v32, %v380_v31  ;;  %v383_v36 = vld [vmem:[%s1767_s21 + $0x78] sm:$0xff] }
  0x16   : > { %1563 = vmatprep.subr.bf16.mxu1 %v1611_v15  ;;  %v391_v37 = vpack.c.bf16 %v383_v36, %v382_v35  ;;  %v932_v36 = vlaneseq }
  0x17   : > { %1532 = vmatpush3.bf16.msra.mxu0 %v1603_v7 }
  0x18   : > { %1533 = vmatprep.subr.bf16.mxu0 %v1604_v10 }
  0x19   : > { %1564 = vmatpush3.bf16.msra.mxu1 %v1611_v15 }
  0x1a   : > { %1565 = vmatprep.subr.bf16.mxu1 %v1612_v21 }
  0x1b   : > { %1534 = vmatpush3.bf16.msra.mxu0 %v1604_v10 }
  0x1c   : > { %1535 = vmatprep.subr.bf16.mxu0 %v1605_v12 }
  0x1d   : > { %1566 = vmatpush3.bf16.msra.mxu1 %v1612_v21 }
  0x1e   : > { %1567 = vmatprep.subr.bf16.mxu1 %v1613_v38 }
  0x1f   : > { %1536 = vmatpush3.bf16.msra.mxu0 %v1605_v12 }
  0x20   : > { %1537 = vmatprep.subr.bf16.mxu0 %v1606_v14 }
  0x21   : > { %1568 = vmatpush3.bf16.msra.mxu1 %v1613_v38 }
  0x22   : > { %1569 = vmatprep.subr.bf16.mxu1 %v1614_v39 }
  0x23   : > { %1538 = vmatpush3.bf16.msra.mxu0 %v1606_v14 }
  0x25   : > { %1570 = vmatpush3.bf16.msra.mxu1 %v1614_v39 }
  0x26   : > { %1540 = vmatmul.mubr.bf16.vlgmr.msra.gmra.mrb[0].mxu0 %v385_v20 }
  0x27   : > { %1543 = vmatprep.mubr.bf16.mxu0 %v386_v22 }
  0x2e   : > { %1544 = vmatmul.mubr.bf16.gmra.mrb[4].mxu0 %v387_v27 }
  0x2f   : > { %1547 = vmatprep.mubr.bf16.mxu0 %v388_v28 }
  0x36   : > { %1548 = vmatmul.mubr.bf16.gmra.mrb[8].mxu0 %v389_v33  ;;  %v930_v33 = vld [vmem:[%s2179_s7] sm:$0x1] }
  0x37   : > { %1551 = vmatprep.mubr.bf16.mxu0 %v390_v34  ;;  %v1183_v34 = vsub.f32 0.0, %v930_v33 }
  0x39   : > { %v1184_v35 = vmul.f32 1.442695, %v1183_v34 }
  0x3b   : > { %1615 = vpow2.f32 %v1184_v35 }
  0x3e   : > { %1552 = vmatmul.mubr.bf16.gmra.mrb[12].mxu0 %v391_v37  ;;  %v933_v37 = vshrl.u32 %v932_v36, 7 }
  0x40   : > { %v934_v39 = vsub.s32 0, %v933_v37 }
  0x45   : > { %v1616_v38 = vpop.eup %1615 }
  0xf9   : > { %v1541_v41 = vpop.f32.mrb[0].mxu0 }
  0xfa   : > { %v506_v42 = vadd.f32 %v1541_v41, %v1454_v40  ;;  %v497_v43 = vpop.f32.mrb[1].mxu0  ;;  %v1186_v41 = vmul.f32 0.5, %v1616_v38 }
  0xfb   : > { %v498_v44 = vadd.f32 %v1454_v40, %v497_v43  ;;  %v1542_v45 = vpop.f32.mrb[2].mxu0  ;;  %v1836_v43 = vld [vmem:[%s2177_s5] ss:$0 sm:$0xff] }
  0xfc   : > { %v509_v46 = vadd.f32 %v1542_v45, %v1454_v40  ;;  %v500_v47 = vpop.f32.mrb[3].mxu0  ;;  %v562_v49 = vmax.f32 %v506_v42, 0.0  ;;  %v1191_v42 = vrot.slane %v1186_v41, %v934_v39  ;;  %v1841_v45 = vld [vmem:[%s2178_s6] ss:$0 sm:$0xff] }
  0xfd   : > { %v501_v48 = vadd.f32 %v1454_v40, %v500_v47  ;;  %v560_v51 = vmax.f32 %v498_v44, 0.0 }
  0xfe   : > { %v563_v50 = vmax.f32 %v509_v46, 0.0  ;;  %1192 = vrot.lane.b32.xlu1 %v1191_v42, %s1689_s15 }
  0xff   : > { %v561_v52 = vmax.f32 %v501_v48, 0.0 }
 0x100   : > { %v577_v53 = vpack.c.bf16 %v563_v50, %v562_v49 }
 0x101   : > { %v1545_v54 = vpop.f32.mrb[4].mxu0  ;;  %v576_v55 = vpack.c.bf16 %v561_v52, %v560_v51 }
 0x102   : > { %v522_v56 = vadd.f32 %v1545_v54, %v1454_v40  ;;  %v513_v57 = vpop.f32.mrb[5].mxu0 }
 0x103   : > { %v514_v58 = vadd.f32 %v1454_v40, %v513_v57  ;;  %v1546_v59 = vpop.f32.mrb[6].mxu0  ;;  %1571 = vmatprep.mubr.bf16.mxu1 %v576_v55 }
 0x104   : > { %v566_v60 = vmax.f32 %v522_v56, 0.0  ;;  %v525_v61 = vadd.f32 %v1546_v59, %v1454_v40  ;;  %v516_v62 = vpop.f32.mrb[7].mxu0  ;;  %1572 = vmatmul.mubr.bf16.vlgmr.msra.gmra.mrb[0].mxu1 %v577_v53 }
 0x105   : > { %v564_v63 = vmax.f32 %v514_v58, 0.0  ;;  %v517_v0 = vadd.f32 %v1454_v40, %v516_v62 }
 0x106   : > { %v567_v1 = vmax.f32 %v525_v61, 0.0 }
 0x107   : > { %v565_v2 = vmax.f32 %v517_v0, 0.0 }
 0x108   : > { %v579_v3 = vpack.c.bf16 %v567_v1, %v566_v60 }
 0x109   : > { %v578_v4 = vpack.c.bf16 %v565_v2, %v564_v63  ;;  %v1549_v5 = vpop.f32.mrb[8].mxu0 }
 0x10a   : > { %v538_v6 = vadd.f32 %v1549_v5, %v1454_v40  ;;  %v529_v7 = vpop.f32.mrb[9].mxu0 }
 0x10b   : > { %v530_v8 = vadd.f32 %v1454_v40, %v529_v7  ;;  %v1550_v9 = vpop.f32.mrb[10].mxu0  ;;  %1575 = vmatprep.mubr.bf16.mxu1 %v578_v4 }
 0x10c   : > { %v570_v10 = vmax.f32 %v538_v6, 0.0  ;;  %v541_v11 = vadd.f32 %v1550_v9, %v1454_v40  ;;  %v532_v12 = vpop.f32.mrb[11].mxu0  ;;  %1576 = vmatmul.mubr.bf16.gmra.mrb[4].mxu1 %v579_v3 }
 0x10d   : > { %v568_v13 = vmax.f32 %v530_v8, 0.0  ;;  %v533_v14 = vadd.f32 %v1454_v40, %v532_v12 }
 0x10e   : > { %v571_v15 = vmax.f32 %v541_v11, 0.0 }
 0x10f   : > { %v569_v16 = vmax.f32 %v533_v14, 0.0 }
 0x110   : > { %v581_v17 = vpack.c.bf16 %v571_v15, %v570_v10 }
 0x111   : > { %v580_v18 = vpack.c.bf16 %v569_v16, %v568_v13  ;;  %v1553_v19 = vpop.f32.mrb[12].mxu0 }
 0x112   : > { %v554_v20 = vadd.f32 %v1553_v19, %v1454_v40  ;;  %v545_v21 = vpop.f32.mrb[13].mxu0 }
 0x113   : > { %v546_v22 = vadd.f32 %v1454_v40, %v545_v21  ;;  %v1554_v23 = vpop.f32.mrb[14].mxu0  ;;  %1579 = vmatprep.mubr.bf16.mxu1 %v580_v18 }
 0x114   : > { %v574_v24 = vmax.f32 %v554_v20, 0.0  ;;  %v557_v25 = vadd.f32 %v1554_v23, %v1454_v40  ;;  %v548_v26 = vpop.f32.mrb[15].mxu0  ;;  %1580 = vmatmul.mubr.bf16.gmra.mrb[8].mxu1 %v581_v17 }
 0x115   : > { %v572_v27 = vmax.f32 %v546_v22, 0.0  ;;  %v549_v28 = vadd.f32 %v1454_v40, %v548_v26  ;;  %v1831_v40 = vrot.slane %v930_v33, %v934_v39 }
 0x116   : > { %v575_v29 = vmax.f32 %v557_v25, 0.0 }
 0x117   : > { %v573_v30 = vmax.f32 %v549_v28, 0.0 }
 0x118   : > { %v583_v31 = vpack.c.bf16 %v575_v29, %v574_v24 }
 0x119   : > { %v582_v32 = vpack.c.bf16 %v573_v30, %v572_v27 }
 0x11b   : > { %1583 = vmatprep.mubr.bf16.mxu1 %v582_v32 }
 0x11c   : > { %1584 = vmatmul.mubr.bf16.gmra.mrb[12].mxu1 %v583_v31 }
 0x1d7   : > { %v1573_v44 = vpop.f32.mrb[0].mxu1 }
 0x1d8   : > { %v1844_v46 = vadd.f32 %v1573_v44, %v1836_v43  ;;  %v689_v47 = vpop.f32.mrb[1].mxu1 }
 0x1d9   : > { %v1847_v48 = vadd.f32 %v1836_v43, %v689_v47  ;;  %v1574_v49 = vpop.f32.mrb[2].mxu1 }
 0x1da   : > { %v692_v50 = vpop.f32.mrb[3].mxu1  ;;  %v1073_v51 = vsub.f32 %v1844_v46, %v1841_v45  ;;  %v1857_v54 = vadd.f32 %v1574_v49, %v1836_v43 }
 0x1db   : > { %v1852_v52 = vadd.f32 %v1836_v43, %v692_v50  ;;  %v1071_v53 = vsub.f32 %v1847_v48, %v1841_v45  ;;  %v1033_v49 = vmul.f32 1.442695, %v1847_v48  ;;  %v1961_v50 = vpop.permute.xlu1 %1192 }
 0x1dc   : > { %v1089_v55 = vmul.f32 %v1073_v51, %v1073_v51  ;;  %v1074_v60 = vsub.f32 %v1857_v54, %v1841_v45  ;;  %v1039_v51 = vmul.f32 1.442695, %v1857_v54 }
 0x1dd   : > { %v1087_v56 = vmul.f32 %v1071_v53, %v1071_v53  ;;  %v1072_v57 = vsub.f32 %v1852_v52, %v1841_v45  ;;  %v1035_v53 = vmul.f32 1.442695, %v1852_v52 }
 0x1de   : > { %1123 = vrot.lane.b32.xlu1 %v1089_v55, %s1689_s15  ;;  %v1090_v4 = vmul.f32 %v1074_v60, %v1074_v60 }
 0x1df   : > { %v1577_v58 = vpop.f32.mrb[4].mxu1  ;;  %1119 = vrot.lane.b32.xlu0 %v1087_v56, %s1689_s15  ;;  %v1088_v0 = vmul.f32 %v1072_v57, %v1072_v57 }
 0x1e0   : > { %v705_v59 = vpop.f32.mrb[5].mxu1  ;;  %v1866_v61 = vadd.f32 %v1577_v58, %v1836_v43 }
 0x1e1   : > { %v1869_v62 = vadd.f32 %v1836_v43, %v705_v59  ;;  %v1578_v63 = vpop.f32.mrb[6].mxu1 }
 0x1e2   : > { %v708_v1 = vpop.f32.mrb[7].mxu1  ;;  %v1878_v5 = vadd.f32 %v1578_v63, %v1836_v43  ;;  %v1077_v7 = vsub.f32 %v1866_v61, %v1841_v45  ;;  %v1045_v60 = vmul.f32 1.442695, %v1866_v61 }
 0x1e3   : > { %v1872_v2 = vadd.f32 %v1836_v43, %v708_v1  ;;  %1121 = vrot.lane.b32.xlu0 %v1088_v0, %s1689_s15  ;;  %v1075_v3 = vsub.f32 %v1869_v62, %v1841_v45 }
 0x1e4   : > { %v1093_v14 = vmul.f32 %v1077_v7, %v1077_v7  ;;  %v1078_v16 = vsub.f32 %v1878_v5, %v1841_v45 }
 0x1e5   : > { %v1091_v6 = vmul.f32 %v1075_v3, %v1075_v3  ;;  %v1076_v8 = vsub.f32 %v1872_v2, %v1841_v45 }
 0x1e6   : > { %v1094_v23 = vmul.f32 %v1078_v16, %v1078_v16 }
 0x1e7   : > { %v1581_v9 = vpop.f32.mrb[8].mxu1  ;;  %1127 = vrot.lane.b32.xlu1 %v1091_v6, %s1689_s15  ;;  %1125 = vrot.lane.b32.xlu0 %v1090_v4, %s1689_s15  ;;  %v1092_v15 = vmul.f32 %v1076_v8, %v1076_v8  ;;  %v1041_v4 = vmul.f32 1.442695, %v1869_v62 }
 0x1e8   : > { %v1887_v10 = vadd.f32 %v1581_v9, %v1836_v43  ;;  %v721_v11 = vpop.f32.mrb[9].mxu1  ;;  %v1047_v9 = vmul.f32 1.442695, %v1878_v5 }
 0x1e9   : > { %v1890_v12 = vadd.f32 %v1836_v43, %v721_v11  ;;  %v1582_v13 = vpop.f32.mrb[10].mxu1 }
 0x1ea   : > { %v1895_v17 = vadd.f32 %v1582_v13, %v1836_v43  ;;  %v724_v18 = vpop.f32.mrb[11].mxu1  ;;  %v1081_v21 = vsub.f32 %v1887_v10, %v1841_v45 }
 0x1eb   : > { %1131 = vrot.lane.b32.xlu1 %v1093_v14, %s1689_s15  ;;  %1129 = vrot.lane.b32.xlu0 %v1092_v15, %s1689_s15  ;;  %v1900_v19 = vadd.f32 %v1836_v43, %v724_v18  ;;  %v1079_v20 = vsub.f32 %v1890_v12, %v1841_v45  ;;  %v1043_v18 = vmul.f32 1.442695, %v1872_v2 }
 0x1ec   : > { %v1082_v25 = vsub.f32 %v1895_v17, %v1841_v45  ;;  %v1097_v27 = vmul.f32 %v1081_v21, %v1081_v21 }
 0x1ed   : > { %v1095_v22 = vmul.f32 %v1079_v20, %v1079_v20  ;;  %v1080_v24 = vsub.f32 %v1900_v19, %v1841_v45 }
 0x1ee   : > { %v1098_v35 = vmul.f32 %v1082_v25, %v1082_v25 }
 0x1ef   : > { %v1585_v26 = vpop.f32.mrb[12].mxu1  ;;  %1135 = vrot.lane.b32.xlu1 %v1095_v22, %s1689_s15  ;;  %1133 = vrot.lane.b32.xlu0 %v1094_v23, %s1689_s15  ;;  %v1096_v28 = vmul.f32 %v1080_v24, %v1080_v24 }
 0x1f0   : > { %v1913_v29 = vadd.f32 %v1585_v26, %v1836_v43  ;;  %v737_v30 = vpop.f32.mrb[13].mxu1  ;;  %v1053_v26 = vmul.f32 1.442695, %v1887_v10 }
 0x1f1   : > { %v1916_v31 = vadd.f32 %v1836_v43, %v737_v30  ;;  %v1586_v32 = vpop.f32.mrb[14].mxu1 }
 0x1f2   : > { %v1919_v33 = vadd.f32 %v1586_v32, %v1836_v43  ;;  %v740_v34 = vpop.f32.mrb[15].mxu1  ;;  %v1085_v38 = vsub.f32 %v1913_v29, %v1841_v45  ;;  %v1061_v22 = vmul.f32 1.442695, %v1913_v29  ;;  %v1049_v32 = vmul.f32 1.442695, %v1890_v12 }
 0x1f3   : > { %1139 = vrot.lane.b32.xlu1 %v1097_v27, %s1689_s15  ;;  %1137 = vrot.lane.b32.xlu0 %v1096_v28, %s1689_s15  ;;  %v1924_v36 = vadd.f32 %v1836_v43, %v740_v34  ;;  %v1083_v37 = vsub.f32 %v1916_v31, %v1841_v45 }
 0x1f4   : > { %v1101_v42 = vmul.f32 %v1085_v38, %v1085_v38  ;;  %v1086_v43 = vsub.f32 %v1919_v33, %v1841_v45 }
 0x1f5   : > { %v1099_v39 = vmul.f32 %v1083_v37, %v1083_v37  ;;  %v1084_v41 = vsub.f32 %v1924_v36, %v1841_v45  ;;  %v1037_v45 = vmul.f32 1.442695, %v1844_v46 }
 0x1f6   : > { %v1102_v47 = vmul.f32 %v1086_v43, %v1086_v43 }
 0x1f7   : > { %1143 = vrot.lane.b32.xlu1 %v1099_v39, %s1689_s15  ;;  %1141 = vrot.lane.b32.xlu0 %v1098_v35, %s1689_s15  ;;  %v1100_v44 = vmul.f32 %v1084_v41, %v1084_v41  ;;  %1617 = vpow2.f32 %v1037_v45 }
 0x1f8   : > { %1619 = vpow2.f32 %v1033_v49  ;;  %v1051_v49 = vmul.f32 1.442695, %v1900_v19 }
 0x1f9   : > { %1621 = vpow2.f32 %v1039_v51 }
 0x1fa   : > { %1623 = vpow2.f32 %v1035_v53 }
 0x1fb   : > { %1147 = vrot.lane.b32.xlu1 %v1101_v42, %s1689_s15  ;;  %1145 = vrot.lane.b32.xlu0 %v1100_v44, %s1689_s15  ;;  %1625 = vpow2.f32 %v1045_v60  ;;  %v1055_v42 = vmul.f32 1.442695, %v1895_v17  ;;  %v1057_v60 = vmul.f32 1.442695, %v1916_v31 }
 0x1fc   : > { %1627 = vpow2.f32 %v1041_v4  ;;  %v1059_v4 = vmul.f32 1.442695, %v1924_v36 }
 0x1fd   : > { %1629 = vpow2.f32 %v1047_v9  ;;  %v1063_v9 = vmul.f32 1.442695, %v1919_v33 }
 0x1fe   : > { %1631 = vpow2.f32 %v1043_v18 }
 0x1ff   : > { %953 = vrot.lane.b32.xlu1 %v1847_v48, %s1690_s22  ;;  %1149 = vrot.lane.b32.xlu0 %v1102_v47, %s1689_s15  ;;  %1633 = vpow2.f32 %v1061_v22 }
 0x200   : > { %1635 = vpow2.f32 %v1053_v26 }
 0x201   : > { %v1618_v55 = vpop.eup %1617  ;;  %1637 = vpow2.f32 %v1049_v32 }
 0x202   : > { %v1620_v57 = vpop.eup %1619  ;;  %1639 = vpow2.f32 %v1055_v42  ;;  %v756_v42 = vmul.f32 0.5, %v1869_v62 }
 0x203   : > { %957 = vrot.lane.b32.xlu1 %v1844_v46, %s1690_s22  ;;  %955 = vrot.lane.b32.xlu0 %v1852_v52, %s1690_s22  ;;  %v1622_v6 = vpop.eup %1621  ;;  %1641 = vpow2.f32 %v1051_v49  ;;  %v758_v49 = vmul.f32 0.5, %v1866_v61 }
 0x204   : > { %v1624_v13 = vpop.eup %1623  ;;  %1643 = vpow2.f32 %v1057_v60 }
 0x205   : > { %v1626_v20 = vpop.eup %1625  ;;  %1645 = vpow2.f32 %v1059_v4 }
 0x206   : > { %v1628_v27 = vpop.eup %1627  ;;  %1647 = vpow2.f32 %v1063_v9  ;;  %v764_v9 = vmul.f32 0.5, %v1916_v31 }
 0x207   : > { %961 = vrot.lane.b32.xlu1 %v1869_v62, %s1690_s22  ;;  %959 = vrot.lane.b32.xlu0 %v1857_v54, %s1690_s22  ;;  %v1630_v37 = vpop.eup %1629 }
 0x208   : > { %v1632_v44 = vpop.eup %1631 }
 0x209   : > { %v1634_v45 = vpop.eup %1633 }
 0x20b   : > { %963 = vrot.lane.b32.xlu1 %v1872_v2, %s1690_s22 }
 0x20f   : > { %965 = vrot.lane.b32.xlu1 %v1866_v61, %s1690_s22 }
 0x213   : > { %967 = vrot.lane.b32.xlu1 %v1878_v5, %s1690_s22 }
 0x217   : > { %969 = vrot.lane.b32.xlu1 %v1890_v12, %s1690_s22 }
 0x21b   : > { %971 = vrot.lane.b32.xlu1 %v1900_v19, %s1690_s22 }
 0x250   : > { %v1124_v56 = vpop.permute.xlu1 %1123 }
 0x251   : > { %v1169_v58 = vadd.f32 %v1618_v55, %v1124_v56  ;;  %v1120_v59 = vpop.permute.xlu0 %1119  ;;  %v1636_v55 = vpop.eup %1635 }
 0x252   : > { %v1167_v63 = vadd.f32 %v1620_v57, %v1120_v59 }
 0x253   : > { %v1197_v0 = vmul.f32 %v1961_v50, %v1169_v58 }
 0x254   : > { %v1195_v1 = vmul.f32 %v1961_v50, %v1167_v63  ;;  %v1638_v63 = vpop.eup %1637 }
 0x255   : > { %1231 = vrot.lane.b32.xlu0 %v1197_v0, %s1690_s22  ;;  %v1122_v3 = vpop.permute.xlu0 %1121 }
 0x256   : > { %1227 = vrot.lane.b32.xlu1 %v1195_v1, %s1690_s22  ;;  %v1168_v14 = vadd.f32 %v1624_v13, %v1122_v3 }
 0x258   : > { %v1196_v23 = vmul.f32 %v1961_v50, %v1168_v14 }
 0x259   : > { %v1128_v7 = vpop.permute.xlu1 %1127  ;;  %v1126_v8 = vpop.permute.xlu0 %1125 }
 0x25a   : > { %v1170_v11 = vadd.f32 %v1622_v6, %v1126_v8  ;;  %973 = vrot.lane.b32.xlu1 %v1887_v10, %s1690_s22  ;;  %v1171_v28 = vadd.f32 %v1628_v27, %v1128_v7  ;;  %v1640_v6 = vpop.eup %1639 }
 0x25c   : > { %v1198_v15 = vmul.f32 %v1961_v50, %v1170_v11  ;;  %v1199_v38 = vmul.f32 %v1961_v50, %v1171_v28  ;;  %v1642_v11 = vpop.eup %1641 }
 0x25d   : > { %v1132_v16 = vpop.permute.xlu1 %1131  ;;  %v1130_v21 = vpop.permute.xlu0 %1129 }
 0x25e   : > { %1233 = vrot.lane.b32.xlu0 %v1198_v15, %s1690_s22  ;;  %975 = vrot.lane.b32.xlu1 %v1895_v17, %s1690_s22  ;;  %v1173_v24 = vadd.f32 %v1626_v20, %v1132_v16  ;;  %v1172_v43 = vadd.f32 %v1632_v44, %v1130_v21  ;;  %v1644_v15 = vpop.eup %1643  ;;  %v752_v16 = vmul.f32 0.5, %v1847_v48 }
 0x25f   : > { %v1646_v22 = vpop.eup %1645 }
 0x260   : > { %v1201_v30 = vmul.f32 %v1961_v50, %v1173_v24  ;;  %v1200_v57 = vmul.f32 %v1961_v50, %v1172_v43  ;;  %v753_v24 = vmul.f32 0.5, %v1852_v52  ;;  %v1648_v28 = vpop.eup %1647  ;;  %v776_v43 = vmul.f32 1.442695, %v756_v42 }
 0x261   : > { %v1136_v25 = vpop.permute.xlu1 %1135  ;;  %v1134_v34 = vpop.permute.xlu0 %1133 }
 0x262   : > { %1229 = vrot.lane.b32.xlu0 %v1196_v23, %s1690_s22  ;;  %977 = vrot.lane.b32.xlu1 %v1916_v31, %s1690_s22  ;;  %v1174_v39 = vadd.f32 %v1630_v37, %v1134_v34  ;;  %v1175_v0 = vadd.f32 %v1638_v63, %v1136_v25  ;;  %v768_v23 = vmul.f32 1.442695, %v752_v16  ;;  %v770_v32 = vmul.f32 1.442695, %v753_v24 }
 0x263   : > { %v762_v63 = vmul.f32 0.5, %v1887_v10 }
 0x264   : > { %v1202_v47 = vmul.f32 %v1961_v50, %v1174_v39  ;;  %v1203_v7 = vmul.f32 %v1961_v50, %v1175_v0  ;;  %1649 = vpow2.f32 %v768_v23 }
 0x265   : > { %v1140_v35 = vpop.permute.xlu1 %1139  ;;  %v1138_v56 = vpop.permute.xlu0 %1137  ;;  %1651 = vpow2.f32 %v770_v32  ;;  %v788_v4 = vmul.f32 1.442695, %v762_v63 }
 0x266   : > { %1239 = vrot.lane.b32.xlu0 %v1201_v30, %s1690_s22  ;;  %979 = vrot.lane.b32.xlu1 %v1924_v36, %s1690_s22  ;;  %v1177_v58 = vadd.f32 %v1636_v55, %v1140_v35  ;;  %v1176_v13 = vadd.f32 %v1642_v11, %v1138_v56  ;;  %v754_v30 = vmul.f32 0.5, %v1844_v46  ;;  %v759_v55 = vmul.f32 0.5, %v1878_v5 }
 0x268   : > { %v1205_v1 = vmul.f32 %v1961_v50, %v1177_v58  ;;  %v1204_v20 = vmul.f32 %v1961_v50, %v1176_v13  ;;  %v772_v37 = vmul.f32 1.442695, %v754_v30  ;;  %v760_v58 = vmul.f32 0.5, %v1890_v12 }
 0x269   : > { %v1144_v41 = vpop.permute.xlu1 %1143  ;;  %v1142_v3 = vpop.permute.xlu0 %1141 }
 0x26a   : > { %1235 = vrot.lane.b32.xlu0 %v1199_v38, %s1690_s22  ;;  %981 = vrot.lane.b32.xlu1 %v1913_v29, %s1690_s22  ;;  %v1178_v8 = vadd.f32 %v1640_v6, %v1142_v3  ;;  %v1179_v21 = vadd.f32 %v1644_v15, %v1144_v41  ;;  %v755_v38 = vmul.f32 0.5, %v1857_v54  ;;  %1653 = vpow2.f32 %v772_v37 }
 0x26b   : > { %v784_v0 = vmul.f32 1.442695, %v760_v58  ;;  %v763_v6 = vmul.f32 0.5, %v1895_v17  ;;  %v765_v15 = vmul.f32 0.5, %v1924_v36 }
 0x26c   : > { %v1206_v14 = vmul.f32 %v1961_v50, %v1178_v8  ;;  %v1207_v25 = vmul.f32 %v1961_v50, %v1179_v21  ;;  %v774_v41 = vmul.f32 1.442695, %v755_v38 }
 0x26d   : > { %v1148_v51 = vpop.permute.xlu1 %1147  ;;  %v1146_v18 = vpop.permute.xlu0 %1145  ;;  %v790_v8 = vmul.f32 1.442695, %v763_v6  ;;  %v794_v21 = vmul.f32 1.442695, %v765_v15 }
 0x26e   : > { %v1181_v53 = vadd.f32 %v1634_v45, %v1148_v51  ;;  %1241 = vrot.lane.b32.xlu0 %v1202_v47, %s1690_s22  ;;  %983 = vrot.lane.b32.xlu1 %v1919_v33, %s1690_s22  ;;  %v1180_v26 = vadd.f32 %v1646_v22, %v1146_v18  ;;  %v1650_v44 = vpop.eup %1649  ;;  %1655 = vpow2.f32 %v774_v41  ;;  %v757_v47 = vmul.f32 0.5, %v1872_v2 }
 0x26f   : > { %v1652_v45 = vpop.eup %1651  ;;  %1657 = vpow2.f32 %v776_v43 }
 0x270   : > { %v1209_v59 = vmul.f32 %v1961_v50, %v1181_v53  ;;  %v1208_v34 = vmul.f32 %v1961_v50, %v1180_v26  ;;  %v780_v53 = vmul.f32 1.442695, %v758_v49 }
 0x271   : > { %v1150_v27 = vpop.permute.xlu0 %1149 }
 0x272   : > { %1237 = vrot.lane.b32.xlu0 %v1200_v57, %s1690_s22  ;;  %1255 = vrot.lane.b32.xlu1 %v1209_v59, %s1690_s22  ;;  %v1182_v35 = vadd.f32 %v1648_v28, %v1150_v27  ;;  %v782_v57 = vmul.f32 1.442695, %v759_v55  ;;  %v954_v59 = vpop.permute.xlu1 %953 }
 0x274   : > { %v1210_v39 = vmul.f32 %v1961_v50, %v1182_v35  ;;  %v778_v50 = vmul.f32 1.442695, %v757_v47  ;;  %v1654_v51 = vpop.eup %1653 }
 0x275   : > { %v956_v30 = vpop.permute.xlu0 %955 }
 0x276   : > { %1247 = vrot.lane.b32.xlu0 %v1205_v1, %s1690_s22  ;;  %1659 = vpow2.f32 %v778_v50  ;;  %v958_v3 = vpop.permute.xlu1 %957  ;;  %v1002_v42 = vsub.f32 %v1831_v40, %v956_v30 }
 0x277   : > { %1661 = vpow2.f32 %v780_v53  ;;  %v1003_v50 = vsub.f32 %v1831_v40, %v958_v3 }
 0x278   : > { %v1656_v56 = vpop.eup %1655  ;;  %1663 = vpow2.f32 %v782_v57 }
 0x279   : > { %v1658_v60 = vpop.eup %1657  ;;  %1665 = vpow2.f32 %v784_v0  ;;  %v960_v35 = vpop.permute.xlu0 %959  ;;  %v1019_v57 = vmul.f32 0.5, %v1003_v50 }
 0x27a   : > { %1243 = vrot.lane.b32.xlu0 %v1203_v7, %s1690_s22  ;;  %1667 = vpow2.f32 %v788_v4  ;;  %v962_v11 = vpop.permute.xlu1 %961 }
 0x27b   : > { %1669 = vpow2.f32 %v790_v8  ;;  %v1005_v58 = vsub.f32 %v1831_v40, %v962_v11 }
 0x27e   : > { %1249 = vrot.lane.b32.xlu0 %v1206_v14, %s1690_s22  ;;  %v792_v14 = vmul.f32 1.442695, %v764_v9  ;;  %v964_v18 = vpop.permute.xlu1 %963 }
 0x280   : > { %v1660_v1 = vpop.eup %1659  ;;  %1671 = vpow2.f32 %v792_v14 }
 0x281   : > { %v1662_v7 = vpop.eup %1661  ;;  %1673 = vpow2.f32 %v794_v21 }
 0x282   : > { %1245 = vrot.lane.b32.xlu0 %v1204_v20, %s1690_s22  ;;  %v1664_v13 = vpop.eup %1663  ;;  %v767_v20 = vmul.f32 0.5, %v1919_v33  ;;  %v966_v24 = vpop.permute.xlu1 %965 }
 0x283   : > { %v1666_v16 = vpop.eup %1665  ;;  %v1007_v21 = vsub.f32 %v1831_v40, %v966_v24 }
 0x284   : > { %v1668_v22 = vpop.eup %1667  ;;  %v798_v23 = vmul.f32 1.442695, %v767_v20 }
 0x286   : > { %1251 = vrot.lane.b32.xlu0 %v1207_v25, %s1690_s22  ;;  %v1670_v25 = vpop.eup %1669  ;;  %1675 = vpow2.f32 %v798_v23  ;;  %v968_v27 = vpop.permute.xlu1 %967 }
 0x28a   : > { %1253 = vrot.lane.b32.xlu0 %v1208_v34, %s1690_s22  ;;  %v1672_v26 = vpop.eup %1671  ;;  %v970_v32 = vpop.permute.xlu1 %969 }
 0x28b   : > { %v1674_v28 = vpop.eup %1673 }
 0x28e   : > { %1257 = vrot.lane.b32.xlu0 %v1210_v39, %s1690_s22  ;;  %v2049_v37 = vpop.permute.xlu1 %971 }
 0x290   : > { %v1676_v34 = vpop.eup %1675 }
 0x292   : > { %832 = vrot.lane.b32.xlu0 %v1650_v44, %s1690_s22  ;;  %v1001_v44 = vsub.f32 %v1831_v40, %v954_v59  ;;  %v1021_v59 = vmul.f32 0.5, %v1005_v58 }
 0x294   : > { %v1017_v49 = vmul.f32 0.5, %v1001_v44 }
 0x296   : > { %834 = vrot.lane.b32.xlu0 %v1652_v45, %s1690_s22  ;;  %v1018_v45 = vmul.f32 0.5, %v1002_v42 }
 0x29a   : > { %836 = vrot.lane.b32.xlu0 %v1654_v51, %s1690_s22 }
 0x29e   : > { %838 = vrot.lane.b32.xlu0 %v1656_v56, %s1690_s22 }
 0x2a2   : > { %840 = vrot.lane.b32.xlu0 %v1658_v60, %s1690_s22  ;;  %v1004_v60 = vsub.f32 %v1831_v40, %v960_v35  ;;  %v1008_v35 = vsub.f32 %v1831_v40, %v968_v27 }
 0x2a4   : > { %v1020_v6 = vmul.f32 0.5, %v1004_v60 }
 0x2a6   : > { %842 = vrot.lane.b32.xlu0 %v1660_v1, %s1690_s22 }
 0x2aa   : > { %844 = vrot.lane.b32.xlu0 %v1662_v7, %s1690_s22  ;;  %v1006_v7 = vsub.f32 %v1831_v40, %v964_v18 }
 0x2ac   : > { %v1022_v20 = vmul.f32 0.5, %v1006_v7 }
 0x2ae   : > { %846 = vrot.lane.b32.xlu0 %v1664_v13, %s1690_s22 }
 0x2b2   : > { %848 = vrot.lane.b32.xlu0 %v1666_v16, %s1690_s22 }
 0x2b6   : > { %852 = vrot.lane.b32.xlu0 %v1668_v22, %s1690_s22 }
 0x2ba   : > { %854 = vrot.lane.b32.xlu0 %v1670_v25, %s1690_s22 }
 0x2be   : > { %856 = vrot.lane.b32.xlu0 %v1672_v26, %s1690_s22 }
 0x2c2   : > { %858 = vrot.lane.b32.xlu0 %v1674_v28, %s1690_s22 }
 0x2c6   : > { %862 = vrot.lane.b32.xlu0 %v1676_v34, %s1690_s22  ;;  %v1023_v34 = vmul.f32 0.5, %v1007_v21 }
 0x2c7   : > { %v1232_v38 = vpop.permute.xlu0 %1231 }
 0x2c8   : > { %v1228_v39 = vpop.permute.xlu1 %1227  ;;  %v1277_v1 = vadd.f32 %v1232_v38, %v1019_v57  ;;  %v1009_v38 = vsub.f32 %v1831_v40, %v970_v32 }
 0x2c9   : > { %v1275_v55 = vadd.f32 %v1228_v39, %v1017_v49 }
 0x2ca   : > { %v1475_v13 = vadd.f32 -0.5, %v1277_v1  ;;  %v1025_v49 = vmul.f32 0.5, %v1009_v38 }
 0x2cb   : > { %v1473_v4 = vadd.f32 -0.5, %v1275_v55 }
 0x2cc   : > { %v974_v43 = vpop.permute.xlu1 %973  ;;  %v1310_v23 = vsel %vm912_vm0, %v1475_v13, 0.0 }
 0x2cd   : > { %v1307_v14 = vsel %vm912_vm0, %v1473_v4, 0.0  ;;  %v1011_v58 = vsub.f32 %v1831_v40, %v974_v43 }
 0x2cf   : > { %v1027_v4 = vmul.f32 0.5, %v1011_v58 }
 0x2d0   : > { %v1234_v41 = vpop.permute.xlu0 %1233  ;;  %v976_v56 = vpop.permute.xlu1 %975 }
 0x2d1   : > { %v1278_v15 = vadd.f32 %v1234_v41, %v1020_v6 }
 0x2d3   : > { %v1476_v25 = vadd.f32 -0.5, %v1278_v15 }
 0x2d4   : > { %v1230_v47 = vpop.permute.xlu0 %1229  ;;  %v978_v8 = vpop.permute.xlu1 %977 }
 0x2d5   : > { %v1276_v51 = vadd.f32 %v1230_v47, %v1018_v45  ;;  %v1312_v42 = vsel %vm912_vm0, %v1476_v25, 0.0  ;;  %v1024_v45 = vmul.f32 0.5, %v1008_v35  ;;  %v1013_v43 = vsub.f32 %v1831_v40, %v978_v8 }
 0x2d7   : > { %v1474_v63 = vadd.f32 -0.5, %v1276_v51  ;;  %v1029_v25 = vmul.f32 0.5, %v1013_v43 }
 0x2d8   : > { %v1240_v53 = vpop.permute.xlu0 %1239  ;;  %v980_v30 = vpop.permute.xlu1 %979 }
 0x2d9   : > { %v1308_v3 = vsel %vm912_vm0, %v1474_v63, 0.0  ;;  %v1281_v44 = vadd.f32 %v1240_v53, %v1023_v34  ;;  %v1012_v53 = vsub.f32 %v1831_v40, %v976_v56 }
 0x2da   : > { %v1309_v16 = vadd.f32 %v1308_v3, %v1307_v14 }
 0x2db   : > { %v1479_v27 = vadd.f32 -0.5, %v1281_v44  ;;  %v1028_v15 = vmul.f32 0.5, %v1012_v53 }
 0x2dc   : > { %v1236_v0 = vpop.permute.xlu0 %1235  ;;  %v1311_v18 = vadd.f32 %v1310_v23, %v1309_v16  ;;  %v982_v55 = vpop.permute.xlu1 %981 }
 0x2dd   : > { %v1279_v11 = vadd.f32 %v1236_v0, %v1021_v59  ;;  %v1010_v0 = vsub.f32 %v1831_v40, %v2049_v37  ;;  %v1318_v59 = vsel %vm912_vm0, %v1479_v27, 0.0 }
 0x2de   : > { %v1313_v47 = vadd.f32 %v1312_v42, %v1311_v18 }
 0x2df   : > { %v1477_v26 = vadd.f32 -0.5, %v1279_v11  ;;  %v1026_v14 = vmul.f32 0.5, %v1010_v0  ;;  %v1015_v11 = vsub.f32 %v1831_v40, %v982_v55 }
 0x2e0   : > { %v1242_v9 = vpop.permute.xlu0 %1241  ;;  %v984_v3 = vpop.permute.xlu1 %983 }
 0x2e1   : > { %v1314_v24 = vsel %vm912_vm0, %v1477_v26, 0.0  ;;  %v1282_v60 = vadd.f32 %v1242_v9, %v1024_v45  ;;  %v1031_v8 = vmul.f32 0.5, %v1015_v11 }
 0x2e2   : > { %v1315_v51 = vadd.f32 %v1314_v24, %v1313_v47  ;;  %v1016_v24 = vsub.f32 %v1831_v40, %v984_v3 }
 0x2e3   : > { %v1480_v6 = vadd.f32 -0.5, %v1282_v60 }
 0x2e4   : > { %v1238_v22 = vpop.permute.xlu0 %1237  ;;  %v1256_v18 = vpop.permute.xlu1 %1255  ;;  %v1032_v58 = vmul.f32 0.5, %v1016_v24  ;;  %v806_v24 = vld [vmem:[%s2085_s25 + $0x30] sm:$0xff] }
 0x2e5   : > { %v1280_v28 = vadd.f32 %v1238_v22, %v1022_v20  ;;  %v1320_v37 = vsel %vm912_vm0, %v1480_v6, 0.0  ;;  %v1014_v22 = vsub.f32 %v1831_v40, %v980_v30  ;;  %v1289_v47 = vadd.f32 %v1256_v18, %v1031_v8 }
 0x2e7   : > { %v1478_v39 = vadd.f32 -0.5, %v1280_v28  ;;  %v1030_v42 = vmul.f32 0.5, %v1014_v22  ;;  %v1487_v27 = vadd.f32 -0.5, %v1289_v47 }
 0x2e8   : > { %v1248_v41 = vpop.permute.xlu0 %1247 }
 0x2e9   : > { %v1316_v50 = vsel %vm912_vm0, %v1478_v39, 0.0  ;;  %v1285_v9 = vadd.f32 %v1248_v41, %v1027_v4  ;;  %v800_v4 = vld [vmem:[%s2085_s25] sm:$0xff] }
 0x2ea   : > { %v1317_v63 = vadd.f32 %v1316_v50, %v1315_v51 }
 0x2eb   : > { %v1483_v26 = vadd.f32 -0.5, %v1285_v9  ;;  %v801_v9 = vld [vmem:[%s2085_s25 + $0x8] sm:$0xff] }
 0x2ec   : > { %v1244_v57 = vpop.permute.xlu0 %1243  ;;  %v1319_v13 = vadd.f32 %v1318_v59, %v1317_v63  ;;  %v1334_v59 = vsel %vm912_vm0, %v1487_v27, 0.0  ;;  %v810_v27 = vld [vmem:[%s2085_s25 + $0x50] sm:$0xff] }
 0x2ed   : > { %v1283_v32 = vadd.f32 %v1244_v57, %v1025_v49  ;;  %v1326_v30 = vsel %vm912_vm0, %v1483_v26, 0.0  ;;  %v803_v26 = vld [vmem:[%s2085_s25 + $0x18] sm:$0xff] }
 0x2ee   : > { %v1321_v23 = vadd.f32 %v1320_v37, %v1319_v13 }
 0x2ef   : > { %v1481_v7 = vadd.f32 -0.5, %v1283_v32 }
 0x2f0   : > { %v1250_v1 = vpop.permute.xlu0 %1249 }
 0x2f1   : > { %v1322_v56 = vsel %vm912_vm0, %v1481_v7, 0.0  ;;  %v1286_v20 = vadd.f32 %v1250_v1, %v1028_v15  ;;  %v761_v15 = vmul.f32 0.5, %v1900_v19 }
 0x2f2   : > { %v1323_v34 = vadd.f32 %v1322_v56, %v1321_v23 }
 0x2f3   : > { %v1484_v38 = vadd.f32 -0.5, %v1286_v20  ;;  %v786_v56 = vmul.f32 1.442695, %v761_v15  ;;  %v766_v20 = vmul.f32 0.5, %v1913_v29 }
 0x2f4   : > { %v1246_v16 = vpop.permute.xlu0 %1245 }
 0x2f5   : > { %v1284_v21 = vadd.f32 %v1246_v16, %v1026_v14  ;;  %v1328_v51 = vsel %vm912_vm0, %v1484_v38, 0.0  ;;  %1677 = vpow2.f32 %v786_v56 }
 0x2f7   : > { %v1482_v28 = vadd.f32 -0.5, %v1284_v21  ;;  %v802_v21 = vld [vmem:[%s2085_s25 + $0x10] sm:$0xff] }
 0x2f8   : > { %v1252_v35 = vpop.permute.xlu0 %1251 }
 0x2f9   : > { %v1324_v39 = vsel %vm912_vm0, %v1482_v28, 0.0  ;;  %v1287_v41 = vadd.f32 %v1252_v35, %v1029_v25  ;;  %v804_v35 = vld [vmem:[%s2085_s25 + $0x20] sm:$0xff] }
 0x2fa   : > { %v1325_v44 = vadd.f32 %v1324_v39, %v1323_v34  ;;  %v805_v39 = vld [vmem:[%s2085_s25 + $0x28] sm:$0xff] }
 0x2fb   : > { %v1485_v45 = vadd.f32 -0.5, %v1287_v41 }
 0x2fc   : > { %v1327_v49 = vadd.f32 %v1326_v30, %v1325_v44  ;;  %v1254_v50 = vpop.permute.xlu0 %1253 }
 0x2fd   : > { %v1288_v55 = vadd.f32 %v1254_v50, %v1030_v42  ;;  %v1330_v60 = vsel %vm912_vm0, %v1485_v45, 0.0  ;;  %v807_v45 = vld [vmem:[%s2085_s25 + $0x38] sm:$0xff] }
 0x2fe   : > { %v1329_v57 = vadd.f32 %v1328_v51, %v1327_v49 }
 0x2ff   : > { %v1486_v32 = vadd.f32 -0.5, %v1288_v55 }
 0x300   : > { %v1331_v40 = vadd.f32 %v1330_v60, %v1329_v57  ;;  %v1258_v63 = vpop.permute.xlu0 %1257 }
 0x301   : > { %v1332_v0 = vsel %vm912_vm0, %v1486_v32, 0.0  ;;  %v1290_v53 = vadd.f32 %v1258_v63, %v1032_v58 }
 0x302   : > { %v1333_v1 = vadd.f32 %v1332_v0, %v1331_v40  ;;  %v811_v40 = vld [vmem:[%s2085_s25 + $0x58] sm:$0xff] }
 0x303   : > { %v1488_v6 = vadd.f32 -0.5, %v1290_v53  ;;  %v812_v53 = vld [vmem:[%s2085_s25 + $0x60] sm:$0xff] }
 0x304   : > { %v833_v7 = vpop.permute.xlu0 %832  ;;  %v1335_v3 = vadd.f32 %v1334_v59, %v1333_v1  ;;  %v813_v59 = vld [vmem:[%s2085_s25 + $0x68] sm:$0xff] }
 0x305   : > { %v880_v13 = vmul.f32 %v833_v7, %v800_v4  ;;  %v1336_v14 = vsel %vm912_vm0, %v1488_v6, 0.0 }
 0x306   : > { %v1337_v43 = vadd.f32 %v1336_v14, %v1335_v3  ;;  %v815_v3 = vld [vmem:[%s2085_s25 + $0x78] sm:$0xff] }
 0x307   : > { %v896_v11 = vadd.f32 %v880_v13, %v1847_v48  ;;  %v796_v48 = vmul.f32 1.442695, %v766_v20 }
 0x308   : > { %1338 = vadd.xlane.f32.xlu1 %v1337_v43  ;;  %v835_v16 = vpop.permute.xlu0 %834 }
 0x309   : > { %913 = vst.msk [vmem:[%s2095_s28] sm:$0xff] %vm912_vm0, %v896_v11  ;;  %v881_v37 = vmul.f32 %v835_v16, %v801_v9  ;;  %1679 = vpow2.f32 %v796_v48  ;;  %v809_v9 = vld [vmem:[%s2085_s25 + $0x48] sm:$0xff] }
 0x30b   : > { %v897_v22 = vadd.f32 %v881_v37, %v1852_v52 }
 0x30c   : > { %v837_v23 = vpop.permute.xlu0 %836 }
 0x30d   : > { %914 = vst.msk [vmem:[%s2095_s28 + $0x8] sm:$0xff] %vm912_vm0, %v897_v22  ;;  %v882_v25 = vmul.f32 %v837_v23, %v802_v21 }
 0x30f   : > { %v898_v28 = vadd.f32 %v882_v25, %v1844_v46  ;;  %v1678_v46 = vpop.eup %1677 }
 0x310   : > { %v839_v18 = vpop.permute.xlu0 %838 }
 0x311   : > { %915 = vst.msk [vmem:[%s2095_s28 + $0x10] sm:$0xff] %vm912_vm0, %v898_v28  ;;  %v883_v34 = vmul.f32 %v839_v18, %v803_v26 }
 0x313   : > { %v899_v52 = vadd.f32 %v883_v34, %v1857_v54  ;;  %v1680_v47 = vpop.eup %1679 }
 0x314   : > { %v841_v8 = vpop.permute.xlu0 %840 }
 0x315   : > { %916 = vst.msk [vmem:[%s2095_s28 + $0x18] sm:$0xff] %vm912_vm0, %v899_v52  ;;  %v884_v38 = vmul.f32 %v841_v8, %v804_v35 }
 0x317   : > { %v900_v41 = vadd.f32 %v884_v38, %v1869_v62 }
 0x318   : > { %v843_v42 = vpop.permute.xlu0 %842 }
 0x319   : > { %917 = vst.msk [vmem:[%s2095_s28 + $0x20] sm:$0xff] %vm912_vm0, %v900_v41  ;;  %v885_v44 = vmul.f32 %v843_v42, %v805_v39  ;;  %850 = vrot.lane.b32.xlu1 %v1678_v46, %s1690_s22 }
 0x31b   : > { %v901_v54 = vadd.f32 %v885_v44, %v1872_v2  ;;  %v808_v2 = vld [vmem:[%s2085_s25 + $0x40] sm:$0xff] }
 0x31c   : > { %v845_v30 = vpop.permute.xlu0 %844 }
 0x31d   : > { %918 = vst.msk [vmem:[%s2095_s28 + $0x28] sm:$0xff] %vm912_vm0, %v901_v54  ;;  %v886_v62 = vmul.f32 %v845_v30, %v806_v24  ;;  %860 = vrot.lane.b32.xlu1 %v1680_v47, %s1690_s22 }
 0x31f   : > { %v902_v49 = vadd.f32 %v886_v62, %v1866_v61 }
 0x320   : > { %v847_v50 = vpop.permute.xlu0 %846 }
 0x321   : > { %919 = vst.msk [vmem:[%s2095_s28 + $0x30] sm:$0xff] %vm912_vm0, %v902_v49  ;;  %v887_v51 = vmul.f32 %v847_v50, %v807_v45 }
 0x323   : > { %v903_v55 = vadd.f32 %v887_v51, %v1878_v5 }
 0x324   : > { %v849_v57 = vpop.permute.xlu0 %848 }
 0x325   : > { %920 = vst.msk [vmem:[%s2095_s28 + $0x38] sm:$0xff] %vm912_vm0, %v903_v55  ;;  %v888_v58 = vmul.f32 %v849_v57, %v808_v2 }
 0x327   : > { %v904_v60 = vadd.f32 %v888_v58, %v1890_v12 }
 0x328   : > { %v853_v32 = vpop.permute.xlu0 %852 }
 0x329   : > { %921 = vst.msk [vmem:[%s2095_s28 + $0x40] sm:$0xff] %vm912_vm0, %v904_v60  ;;  %v890_v61 = vmul.f32 %v853_v32, %v810_v27 }
 0x32b   : > { %v906_v63 = vadd.f32 %v890_v61, %v1887_v10 }
 0x32c   : > { %v855_v0 = vpop.permute.xlu0 %854 }
 0x32d   : > { %923 = vst.msk [vmem:[%s2095_s28 + $0x50] sm:$0xff] %vm912_vm0, %v906_v63  ;;  %v891_v5 = vmul.f32 %v855_v0, %v811_v40 }
 0x32f   : > { %v907_v1 = vadd.f32 %v891_v5, %v1895_v17 }
 0x330   : > { %v857_v4 = vpop.permute.xlu0 %856 }
 0x331   : > { %924 = vst.msk [vmem:[%s2095_s28 + $0x58] sm:$0xff] %vm912_vm0, %v907_v1  ;;  %v892_v12 = vmul.f32 %v857_v4, %v812_v53 }
 0x333   : > { %v908_v6 = vadd.f32 %v892_v12, %v1916_v31 }
 0x334   : > { %v859_v7 = vpop.permute.xlu0 %858 }
 0x335   : > { %925 = vst.msk [vmem:[%s2095_s28 + $0x60] sm:$0xff] %vm912_vm0, %v908_v6  ;;  %v893_v10 = vmul.f32 %v859_v7, %v813_v59 }
 0x337   : > { %v909_v13 = vadd.f32 %v893_v10, %v1924_v36  ;;  %v814_v36 = vld [vmem:[%s2085_s25 + $0x70] sm:$0xff] }
 0x338   : > { %v863_v14 = vpop.permute.xlu0 %862 }
 0x339   : > { %926 = vst.msk [vmem:[%s2095_s28 + $0x68] sm:$0xff] %vm912_vm0, %v909_v13  ;;  %v895_v17 = vmul.f32 %v863_v14, %v815_v3 }
 0x33b   : > { %v911_v15 = vadd.f32 %v895_v17, %v1919_v33 }
 0x33d   : > { %928 = vst.msk [vmem:[%s2095_s28 + $0x78] sm:$0xff] %vm912_vm0, %v911_v15 }
 0x395   : > { %v1339_v43 = vpop.xlane.xlu1 %1338 }
 0x396   : > { %v1340_v31 = vrot.slane %v1339_v43, 4 }
 0x398   : > { %v1341_v11 = vadd.f32 %v1340_v31, %v1339_v43 }
 0x399   : > { %v851_v16 = vpop.permute.xlu1 %850 }
 0x39a   : > { %v1342_v37 = vrot.slane %v1341_v11, 2  ;;  %v889_v56 = vmul.f32 %v851_v16, %v809_v9 }
 0x39c   : > { %v905_v20 = vadd.f32 %v889_v56, %v1900_v19  ;;  %v1343_v21 = vadd.f32 %v1342_v37, %v1341_v11 }
 0x39d   : > { %v861_v22 = vpop.permute.xlu1 %860 }
 0x39e   : > { %922 = vst.msk [vmem:[%s2095_s28 + $0x48] sm:$0xff] %vm912_vm0, %v905_v20  ;;  %v894_v33 = vmul.f32 %v861_v22, %v814_v36  ;;  %v1344_v23 = vrot.slane %v1343_v21, 1 }
 0x3a0   : > { %v910_v25 = vadd.f32 %v894_v33, %v1913_v29  ;;  %v1345_v48 = vadd.f32 %v1344_v23, %v1343_v21 }
 0x3a2   : > { %927 = vst.msk [vmem:[%s2095_s28 + $0x70] sm:$0xff] %vm912_vm0, %v910_v25 }
 0x3a3   : > { %1587 = vpush %v1345_v48 }
 0x3d4   : > { %s1588_s12 = spop %1587 }
 0x3d5   : > { %v1347_v19 = vstv %s1588_s12 }
 0x3d6   : > { %1349 = vst.msk [vmem:[%s366_s11] sm:$0x1] %vm1348_vm1, %v1347_v19 }
 0x3d7 PF: > { %s20_s30 = sadd.s32 1, %s1687_s30  }
 0x3d8   : > { %p17_p5 = scmp.ge.s32.totalorder %s20_s30, 4  }
 0x3da   :  { %19 = sbr.rel (!%p17_p5) target bundleno = 1 (0x1), region = 97 }

</bundles_post_ra>
